<compile_context>
chip_gen: v7x
topology: tpu7x:2x2x1
jax: 0.10.0
libtpu: 0.0.40
codegen_flags: <defaults>
</compile_context>

<pallas_src>
import functools

import jax
import jax.numpy as jnp
from jax import lax
from jax.experimental import pallas as pl
from jax.experimental.pallas import tpu as pltpu

LABEL_TILE = 128          # lane-dense label tiling for the attention kernel (128-aligned on all gens)
GATE_M_TILE = 256         # M tile for the hoisted input->gate matmul (multiple of 128, fine on v5e)


def _round_up(x, m):
    return ((x + m - 1) // m) * m


def _vmem_limit_bytes():
    """Generation-aware scoped-VMEM budget: ~48 MiB on v7x (64 MiB/TC), ~96 MiB on v5e/v6e."""
    cap = 128 * 1024 * 1024
    try:
        cap = int(pltpu.get_tpu_info().vmem_capacity_bytes)
    except Exception:
        pass
    return max(32 * 1024 * 1024, min(cap * 3 // 4, 96 * 1024 * 1024))


def _recurrence_tile(n, seq_len, hidden, vmem_limit):
    """Pick the recurrence batch tile tn (MXU M dim) from a VMEM budget, and the padded batch."""
    # per batch row resident in VMEM: gx (L,8H) bf16 + output (L,2H) bf16, ~2x double-buffered.
    per_row = seq_len * (8 * hidden + 2 * hidden) * 2
    budget = int(vmem_limit * 0.75)
    tn_cap = max(8, (budget // (2 * per_row)) // 8 * 8)
    tn = min(256, tn_cap, _round_up(n, 8))        # target a big M tile; never below 8
    tn = max(8, (tn // 8) * 8)
    n_pad = _round_up(n, tn)
    # keep >= 2 grid steps when it does not drop tn below 128 (dual-TensorCore v7x)
    if n_pad == tn and tn >= 256:
        tn //= 2
    return tn, n_pad


# --------------------------------------------------------------------------
# Kernel 1: hoisted input->gate projection for one BiLSTM layer.
#   x_ref : (TM, Din)  bf16 time-major rows (row = t*N + n), zero-padded
#   w_ref : (Din, 8H)  bf16   [Wih_fwd | Wih_bwd]   (i/f/o columns pre-scaled by 0.5)
#   b_ref : (1, 8H)    f32    b_ih + b_hh, both dirs (same pre-scale)
#   o_ref : (TM, 8H)   bf16   gate pre-activations
# --------------------------------------------------------------------------
def gates_kernel(x_ref, w_ref, b_ref, o_ref):
    acc = jnp.dot(x_ref[...], w_ref[...], preferred_element_type=jnp.float32) + b_ref[...]
    o_ref[...] = acc.astype(o_ref.dtype)


def gate_projection(x2d, wih, b, vmem_limit):
    m, din = x2d.shape
    g8 = wih.shape[1]
    tm = GATE_M_TILE
    m_pad = _round_up(m, tm)
    if m_pad != m:
        x2d = jnp.pad(x2d, ((0, m_pad - m), (0, 0)))
    out = pl.pallas_call(
        gates_kernel,
        out_shape=jax.ShapeDtypeStruct((m_pad, g8), jnp.bfloat16),
        grid=(m_pad // tm,),
        in_specs=[pl.BlockSpec((tm, din), lambda i: (i, 0)),
                  pl.BlockSpec((din, g8), lambda i: (0, 0)),
                  pl.BlockSpec((1, g8), lambda i: (0, 0))],
        out_specs=pl.BlockSpec((tm, g8), lambda i: (i, 0)),
        compiler_params=pltpu.CompilerParams(
            dimension_semantics=("parallel",),
            vmem_limit_bytes=vmem_limit),
    )(x2d, wih, b)
    return out[:m]


# --------------------------------------------------------------------------
# Kernel 2: fused bidirectional LSTM recurrence (PyTorch gate order i, f, g, o).
#   gx_ref  : (L, TN, 8H) bf16  precomputed x@Wih + bias (fwd gates | bwd gates)
#   len_ref : (TN, 1)     i32   sequence lengths for this batch tile
#   whh_ref : merged -> (2H, 8H) bf16 block-diag(whh_f, whh_b); else (2, H, 4H) bf16
#   out_ref : (L, TN, 2H) bf16  [h_fwd | h_bwd]
# i/f/o weight columns are pre-scaled by 0.5 so sigmoid(z) = 0.5*(tanh(z/2)+1): one tanh per
# (TN, 4H) slab per direction instead of per-gate sigmoid/tanh slices (EUP-slot relief).
# --------------------------------------------------------------------------
def bilstm_kernel(gx_ref, len_ref, whh_ref, out_ref, *, hidden, merged):
    H = hidden
    G = 4 * H
    L = gx_ref.shape[0]
    TN = gx_ref.shape[1]

    whh = whh_ref[...]                 # hoisted out of the recurrence
    len_col = len_ref[...]             # (TN, 1) int32

    h0 = jnp.zeros((TN, H), jnp.float32)

    def gate_math(gates, c):
        y = jnp.tanh(gates)                        # single EUP pass over (TN, 4H)
        i = 0.5 * (y[:, 0 * H:1 * H] + 1.0)
        f = 0.5 * (y[:, 1 * H:2 * H] + 1.0)
        g = y[:, 2 * H:3 * H]
        o = 0.5 * (y[:, 3 * H:4 * H] + 1.0)
        c_new = f * c + i * g
        return o * jnp.tanh(c_new), c_new

    def body(t, carry):
        h_f, c_f, h_b, c_b = carry
        tb = L - 1 - t

        if merged:
            # one MXU push for both directions: [h_f | h_b] @ block_diag(whh_f, whh_b)
            hcat = jnp.concatenate([h_f, h_b], axis=-1).astype(jnp.bfloat16)
            rec = jnp.dot(hcat, whh, preferred_element_type=jnp.float32)      # (TN, 8H)
            rec_f, rec_b = rec[:, :G], rec[:, G:]
        else:
            rec_f = jnp.dot(h_f.astype(jnp.bfloat16), whh[0],
                            preferred_element_type=jnp.float32)
            rec_b = jnp.dot(h_b.astype(jnp.bfloat16), whh[1],
                            preferred_element_type=jnp.float32)

        gates_f = gx_ref[t, :, :G].astype(jnp.float32) + rec_f
        gates_b = gx_ref[tb, :, G:].astype(jnp.float32) + rec_b

        h_f, c_f = gate_math(gates_f, c_f)
        h_bn, c_bn = gate_math(gates_b, c_b)

        # backward direction: freeze (zero) state at padded steps -> packed-seq semantics
        valid_b = tb < len_col
        h_b = jnp.where(valid_b, h_bn, h_b)
        c_b = jnp.where(valid_b, c_bn, c_b)

        # forward half zeroed at padded positions (matches pad_packed_sequence)
        valid_f = t < len_col
        out_ref[t, :, :H] = jnp.where(valid_f, h_f, 0.0).astype(jnp.bfloat16)
        out_ref[tb, :, H:] = h_b.astype(jnp.bfloat16)
        return h_f, c_f, h_b, c_b

    lax.fori_loop(0, L, body, (h0, h0, h0, h0), unroll=2)


def bilstm_recurrence(gx, len2d, whh, hidden, merged, tn, vmem_limit):
    L, n_pad, g8 = gx.shape
    kern = functools.partial(bilstm_kernel, hidden=hidden, merged=merged)
    whh_ndim = whh.ndim
    return pl.pallas_call(
        kern,
        out_shape=jax.ShapeDtypeStruct((L, n_pad, 2 * hidden), jnp.bfloat16),
        grid=(n_pad // tn,),
        in_specs=[pl.BlockSpec((L, tn, g8), lambda i: (0, i, 0)),
                  pl.BlockSpec((tn, 1), lambda i: (i, 0)),
                  pl.BlockSpec(whh.shape, lambda i: (0,) * whh_ndim)],
        out_specs=pl.BlockSpec((L, tn, 2 * hidden), lambda i: (0, i, 0)),
        compiler_params=pltpu.CompilerParams(
            dimension_semantics=("parallel",),
            vmem_limit_bytes=vmem_limit),
    )(gx, len2d, whh)


# --------------------------------------------------------------------------
# Kernel 3: MLAttention (masked softmax over L) + MLLinear, one (sample, label-tile).
#   rnn_ref : (1, L, 2H)  bf16
#   mask_ref: (1, 1, L)   f32
#   wa_ref  : (TA, 2H)    bf16 label tile of the attention projection (zero-padded rows)
#   w1_ref  : (2H, K)     bf16 pre-transposed hidden linear
#   b1_ref  : (1, K) f32, wo_ref: (1, K) f32, bo_ref: (1, 1) f32
#   out_ref : (1, 1, TA)  f32 lane-dense logits tile
# --------------------------------------------------------------------------
def attn_linear_kernel(rnn_ref, mask_ref, wa_ref, w1_ref, b1_ref,
                       wo_ref, bo_ref, out_ref):
    r = rnn_ref[0]                                     # (L, 2H) bf16
    m = mask_ref[0]                                    # (1, L) f32
    wa = wa_ref[...]                                   # (TA, 2H) bf16

    # scores[a, l] = sum_h wa[a, h] * r[l, h]
    scores = lax.dot_general(wa, r, (((1,), (1,)), ((), ())),
                             preferred_element_type=jnp.float32)        # (TA, L)
    scores = jnp.where(m > 0.0, scores, -1e30)         # finite fill: no NaN if fully masked

    mx = jnp.max(scores, axis=-1, keepdims=True)
    p = jnp.exp(scores - mx)
    denom = jnp.sum(p, axis=-1, keepdims=True)
    attn = p / denom                                   # exact softmax division

    attn_out = jnp.dot(attn.astype(jnp.bfloat16), r,
                       preferred_element_type=jnp.float32)              # (TA, 2H)

    h1 = jnp.dot(attn_out.astype(jnp.bfloat16), w1_ref[...],
                 preferred_element_type=jnp.float32) + b1_ref[...]      # (TA, K)
    h1 = jnp.maximum(h1, 0.0)

    # final Linear(K -> 1) as a VPU reduction; one small XLU transpose to a lane-dense row
    logit = jnp.sum(h1 * wo_ref[...], axis=-1, keepdims=True)           # (TA, 1)
    out_ref[0] = jnp.transpose(logit, (1, 0)) + bo_ref[...]             # (1, TA)


def attention_and_linear(rnn, mask3, wa, w1, b1, wo, bo, n_samples, vmem_limit):
    _, L, h2 = rnn.shape
    a_pad = wa.shape[0]
    K = w1.shape[1]
    ta = min(LABEL_TILE, a_pad)
    out = pl.pallas_call(
        attn_linear_kernel,
        out_shape=jax.ShapeDtypeStruct((n_samples, 1, a_pad), jnp.float32),
        grid=(n_samples, a_pad // ta),
        in_specs=[pl.BlockSpec((1, L, h2), lambda n, a: (n, 0, 0)),
                  pl.BlockSpec((1, 1, L), lambda n, a: (n, 0, 0)),
                  pl.BlockSpec((ta, h2), lambda n, a: (a, 0)),
                  pl.BlockSpec((h2, K), lambda n, a: (0, 0)),
                  pl.BlockSpec((1, K), lambda n, a: (0, 0)),
                  pl.BlockSpec((1, K), lambda n, a: (0, 0)),
                  pl.BlockSpec((1, 1), lambda n, a: (0, 0))],
        out_specs=pl.BlockSpec((1, 1, ta), lambda n, a: (n, 0, a)),
        compiler_params=pltpu.CompilerParams(
            dimension_semantics=("parallel", "parallel"),
            vmem_limit_bytes=vmem_limit),
    )(rnn, mask3, wa, w1, b1, wo, bo)
    return out[:, 0, :]                                 # (N, A_pad) lane-dense


# --------------------------------------------------------------------------
# Wrapper = AttentionRNN.forward
# --------------------------------------------------------------------------
def attention_rnn_forward(emb_out, lengths, masks, params):
    # emb_out: (N, L, E), lengths: (N,) int, masks: (N, L) bool
    N, L, _ = emb_out.shape
    H = params["hidden_size"]
    vmem_limit = _vmem_limit_bytes()
    tn, n_pad = _recurrence_tile(N, L, H, vmem_limit)

    x = emb_out
    lens = lengths.astype(jnp.int32)
    if n_pad != N:
        x = jnp.pad(x, ((0, n_pad - N), (0, 0), (0, 0)))
        lens = jnp.pad(lens, (0, n_pad - N))            # padded rows: length 0 -> zero output
    len2d = lens.reshape(n_pad, 1)

    x_t = jnp.transpose(x, (1, 0, 2)).astype(jnp.bfloat16)             # (L, n_pad, E)

    for lp in params["lstm_layers"]:                                    # stacked BiLSTM
        din = x_t.shape[-1]
        gates = gate_projection(x_t.reshape(L * n_pad, din), lp["wih"], lp["b"], vmem_limit)
        gates = gates.reshape(L, n_pad, lp["wih"].shape[1])             # (L, n_pad, 8H) bf16
        x_t = bilstm_recurrence(gates, len2d, lp["whh"], H,
                                params["merged"], tn, vmem_limit)       # bf16, no wrapper cast

    rnn = jnp.transpose(x_t, (1, 0, 2))                                 # (n_pad, L, 2H) bf16

    mask3 = masks.astype(jnp.float32)[:, None, :]                       # (N, 1, L)
    logits = attention_and_linear(rnn, mask3, params["wa"], params["w1"],
                                  params["b1"], params["wo"], params["bo"],
                                  N, vmem_limit)
    return logits[:, :params["labels_num"]]                             # (N, labels_num)


# --------------------------------------------------------------------------
# Deterministic parameter init (shapes follow the module's __init__); weight layouts are
# kernel-friendly: Wih/Whh/Wa/W1 pre-transposed, matmul weights bf16, and the i/f/o gate
# columns of Wih/Whh/bias pre-scaled by 0.5 for the single-tanh activation trick.
# --------------------------------------------------------------------------
def init_params(key, emb_size, hidden_size, layers_num, labels_num, linear_hidden):
    keys = iter(jax.random.split(key, 4 * layers_num + 8))
    H = hidden_size

    def xavier(shape, fan_in, fan_out):
        limit = (6.0 / (fan_in + fan_out)) ** 0.5
        return jax.random.uniform(next(keys), shape, jnp.float32, -limit, limit)

    # gate-column scale per direction: 0.5 on i/f/o, 1.0 on g (sigmoid(z)=0.5*(tanh(z/2)+1))
    gscale = jnp.concatenate([jnp.full((2 * H,), 0.5), jnp.ones((H,)), jnp.full((H,), 0.5)])
    gscale2 = jnp.concatenate([gscale, gscale])

    merged = H <= 64          # block-diag h@Whh only pays off when the MXU is underfilled
    lstm_layers = []
    din = emb_size
    for _ in range(layers_num):
        wih_f = xavier((din, 4 * H), din, 4 * H) * gscale
        wih_b = xavier((din, 4 * H), din, 4 * H) * gscale
        whh_f = xavier((H, 4 * H), H, 4 * H) * gscale
        whh_b = xavier((H, 4 * H), H, 4 * H) * gscale
        if merged:
            whh = jnp.zeros((2 * H, 8 * H), jnp.float32)
            whh = whh.at[:H, :4 * H].set(whh_f).at[H:, 4 * H:].set(whh_b)
        else:
            whh = jnp.stack([whh_f, whh_b])                              # (2, H, 4H)
        lstm_layers.append({
            "wih": jnp.concatenate([wih_f, wih_b], axis=1).astype(jnp.bfloat16),  # (din, 8H)
            "b": (jnp.zeros((1, 8 * H), jnp.float32) * gscale2),         # b_ih+b_hh, pre-scaled
            "whh": whh.astype(jnp.bfloat16),
        })
        din = 2 * H

    a_pad = _round_up(labels_num, LABEL_TILE)
    wa_rows = xavier((labels_num, 2 * H), 2 * H, labels_num)
    wa = jnp.zeros((a_pad, 2 * H), jnp.float32).at[:labels_num].set(wa_rows)

    return {
        "labels_num": labels_num,
        "hidden_size": H,
        "merged": merged,
        "lstm_layers": lstm_layers,
        "wa": wa.astype(jnp.bfloat16),                                   # (A_pad, 2H)
        "w1": xavier((2 * H, linear_hidden), 2 * H, linear_hidden).astype(jnp.bfloat16),
        "b1": jnp.zeros((1, linear_hidden), jnp.float32),
        "wo": xavier((1, linear_hidden), linear_hidden, 1),
        "bo": jnp.zeros((1, 1), jnp.float32),
    }


if __name__ == "__main__":
    # model_config: emb_size=32, hidden_size=32, layers_num=1,
    #               class_num=16, linear_size=[32], dropout (eval no-op)
    N, L, E, H, LAYERS, LABELS, K = 2, 8, 32, 32, 1, 16, 32

    key = jax.random.PRNGKey(0)
    k_emb, k_par = jax.random.split(key)

    emb_out = jax.random.normal(k_emb, (N, L, E), jnp.float32)
    lengths = jnp.array([8, 5], dtype=jnp.int32)
    masks = jnp.arange(L)[None, :] < lengths[:, None]                    # (N, L) bool

    params = init_params(k_par, E, H, LAYERS, LABELS, K)

    logits = attention_rnn_forward(emb_out, lengths, masks, params)
    logits = jax.block_until_ready(logits)
    assert logits.shape == (N, LABELS)
    assert bool(jnp.all(jnp.isfinite(logits)))
    print("KERNEL_OK")
</pallas_src>

<mosaic_0001>
module attributes {stable_mosaic.version = 11 : i64} {
  func.func @gates_kernel(%arg0: i32, %arg1: memref<256x32xbf16, #tpu.memory_space<vmem>>, %arg2: memref<32x256xbf16, #tpu.memory_space<vmem>>, %arg3: memref<1x256xf32, #tpu.memory_space<vmem>>, %arg4: memref<256x256xbf16, #tpu.memory_space<vmem>>) attributes {dimension_semantics = [#tpu.dimension_semantics<parallel>], iteration_bounds = array<i64: 1>, scalar_prefetch = 0 : i64, scratch_operands = 0 : i64, tpu.core_type = #tpu.core_type<tc>, window_params = [{transform_indices = @transform_0, window_bounds = array<i64: 256, 32>}, {pipeline_mode = #tpu.pipeline_mode<synchronous>, transform_indices = @transform_1, window_bounds = array<i64: 32, 256>}, {pipeline_mode = #tpu.pipeline_mode<synchronous>, transform_indices = @transform_2, window_bounds = array<i64: 1, 256>}, {transform_indices = @transform_3, window_bounds = array<i64: 256, 256>}]} {
    %c0 = arith.constant 0 : index
    %c0_0 = arith.constant 0 : index
    %0 = vector.load %arg1[%c0, %c0_0] : memref<256x32xbf16, #tpu.memory_space<vmem>>, vector<256x32xbf16>
    %c0_1 = arith.constant 0 : index
    %c0_2 = arith.constant 0 : index
    %1 = vector.load %arg2[%c0_1, %c0_2] : memref<32x256xbf16, #tpu.memory_space<vmem>>, vector<32x256xbf16>
    %cst = arith.constant dense<0.000000e+00> : vector<256x256xf32>
    %2 = tpu.matmul %0, %1, %cst {dimension_numbers = #tpu.dot_dimension_numbers<[1], [0], [0], [1], [0, 0, 1, 1], [], []>} : vector<256x32xbf16>, vector<32x256xbf16>, vector<256x256xf32> -> vector<256x256xf32>
    %c0_3 = arith.constant 0 : index
    %c0_4 = arith.constant 0 : index
    %3 = vector.load %arg3[%c0_3, %c0_4] : memref<1x256xf32, #tpu.memory_space<vmem>>, vector<1x256xf32>
    %4 = vector.broadcast %3 : vector<1x256xf32> to vector<256x256xf32>
    %5 = arith.addf %2, %4 : vector<256x256xf32>
    %6 = arith.truncf %5 : vector<256x256xf32> to vector<256x256xbf16>
    %c0_5 = arith.constant 0 : index
    %c0_6 = arith.constant 0 : index
    %7 = vector.load %arg4[%c0_5, %c0_6] : memref<256x256xbf16, #tpu.memory_space<vmem>>, vector<256x256xbf16>
    tpu.vector_store %arg4[%c0_5, %c0_6], %6 {strides = array<i32>} : memref<256x256xbf16, #tpu.memory_space<vmem>>, vector<256x256xbf16>,
    return
  }
  func.func @transform_0(%arg0: i32) -> (i32, i32) {
    %c0_i32 = arith.constant 0 : i32
    %c0_i32_0 = arith.constant 0 : i32
    return %arg0, %c0_i32 : i32, i32
  }
  func.func @transform_1(%arg0: i32) -> (i32, i32) {
    %c0_i32 = arith.constant 0 : i32
    %c0_i32_0 = arith.constant 0 : i32
    %c0_i32_1 = arith.constant 0 : i32
    return %c0_i32, %c0_i32_0 : i32, i32
  }
  func.func @transform_2(%arg0: i32) -> (i32, i32) {
    %c0_i32 = arith.constant 0 : i32
    %c0_i32_0 = arith.constant 0 : i32
    %c0_i32_1 = arith.constant 0 : i32
    return %c0_i32, %c0_i32_0 : i32, i32
  }
  func.func @transform_3(%arg0: i32) -> (i32, i32) {
    %c0_i32 = arith.constant 0 : i32
    %c0_i32_0 = arith.constant 0 : i32
    return %arg0, %c0_i32 : i32, i32
  }
}

</mosaic_0001>

<bundles_post_ra>
// kernel: tpu_custom_call.1
= control target key start
LH: loop header
LB: loop body
LE: loop exit
PB: predicated region body
PF: predicated region fallthrough
CT: control target
= control target key end

     0   :  { %8 = vsyncpa [#allocation3], 0  ;;  %s1083_s0 = inlined_call_operand.hbm [shape: bf16[256,32], index: 0, kind: input, shape index: {}]   ;;  %s1084_s1 = inlined_call_operand.hbm [shape: bf16[32,256], index: 1, kind: input, shape index: {}]   ;;  %s1085_s2 = inlined_call_operand.hbm [shape: f32[1,256], index: 2, kind: input, shape index: {}]   ;;  %s1086_s3 = inlined_call_operand.hbm [shape: bf16[256,256], index: 3, kind: output, shape index: {}]  }
   0x1   :  { %9 = vsyncpa [#allocation6], 0 }
   0x2   :  { %10 = vsyncpa [#allocation4], 0  ;;  %s916_s12 = smov [#allocation5]   ;;  %s822_s16 = scalar_lea.hbm %s1084_s1, 512 }
   0x3   :  { %s28_s13 = sshll.u32 %s916_s12, 4  ;;  %p823_p0 = scmp.ne.s32.totalorder %s1084_s1, %s822_s16  ;;  %s29_s13 = int_to_ptr.vmem [resolvable:$true] %s28_s13 }
   0x4   :  { %p826_p1 = scmp.lt.u32.totalorder %s822_s16, %s1084_s1 }
   0x6   :  { %p828_p2 = pnand %p826_p1, %p823_p0 }
   0x8   :  { %831 = shalt.err (!%p828_p2)
}
   0x9   :  { %s832_s21 = scalar_lea.vmem %s29_s13, 512  ;;  %p837_p4 = scmp.lt.s32.totalorder %s29_s13, %s29_s13 }
   0xa   :  { %p833_p3 = scmp.ne.s32.totalorder %s29_s13, %s832_s21  ;;  %p838_p5 = scmp.lt.s32.totalorder %s832_s21, %s832_s21 }
   0xc   :  { %p839_p6 = por %p838_p5, %p837_p4 }
   0xe   :  { %p840_p7 = pnand %p839_p6, %p833_p3 }
  0x10   :  { %843 = shalt.err (!%p840_p7)
}
  0x11   :  { %s917_s22 = smov 128   ;;  %s918_s23 = smov 8  }
  0x12   :  { %34 = dma.hbm_to_vmem [thread:$0]  %s1084_s1, 512, %s29_s13, [#allocation6], %s917_s22, %s917_s22, %s918_s23  }
  0x13   :  { %s919_s26 = smov [#allocation2]   ;;  %s844_s30 = scalar_lea.hbm %s1083_s0, 2048 }
  0x14   :  { %s16_s27 = sshll.u32 %s919_s26, 4  ;;  %p845_p8 = scmp.ne.s32.totalorder %s1083_s0, %s844_s30  ;;  %s17_s27 = int_to_ptr.vmem [resolvable:$true] %s16_s27 }
  0x15   :  { %p848_p9 = scmp.lt.u32.totalorder %s844_s30, %s1083_s0 }
  0x17   :  { %p850_p10 = pnand %p848_p9, %p845_p8 }
  0x19   :  { %853 = shalt.err (!%p850_p10)
}
  0x1a   :  { %s854_s8 = scalar_lea.vmem %s17_s27, 2048  ;;  %p859_p12 = scmp.lt.s32.totalorder %s17_s27, %s17_s27 }
  0x1b   :  { %p855_p11 = scmp.ne.s32.totalorder %s17_s27, %s854_s8  ;;  %p860_p13 = scmp.lt.s32.totalorder %s854_s8, %s854_s8 }
  0x1d   :  { %p861_p0 = por %p860_p13, %p859_p12 }
  0x1f   :  { %p862_p1 = pnand %p861_p0, %p855_p11 }
  0x21   :  { %865 = shalt.err (!%p862_p1)
}
  0x22   :  { %s920_s1 = smov 64   ;;  %s921_s9 = smov 4  }
  0x23   :  { %22 = dma.hbm_to_vmem [thread:$0]  %s1083_s0, 2048, %s17_s27, [#allocation3], %s920_s1, %s920_s1, %s921_s9  }
  0x24   :  { %s922_s12 = smov [#allocation7]   ;;  %s866_s16 = scalar_lea.hbm %s1085_s2, 32 }
  0x25   :  { %s41_s13 = sshll.u32 %s922_s12, 4  ;;  %p867_p2 = scmp.ne.s32.totalorder %s1085_s2, %s866_s16  ;;  %s42_s13 = int_to_ptr.vmem [resolvable:$true] %s41_s13 }
  0x26   :  { %p870_p3 = scmp.lt.u32.totalorder %s866_s16, %s1085_s2 }
  0x28   :  { %p872_p4 = pnand %p870_p3, %p867_p2 }
  0x2a   :  { %875 = shalt.err (!%p872_p4)
}
  0x2b   :  { %s876_s21 = scalar_lea.vmem %s42_s13, 32  ;;  %p881_p6 = scmp.lt.s32.totalorder %s42_s13, %s42_s13 }
  0x2c   :  { %p877_p5 = scmp.ne.s32.totalorder %s42_s13, %s876_s21  ;;  %p882_p7 = scmp.lt.s32.totalorder %s876_s21, %s876_s21 }
  0x2e   :  { %p883_p8 = por %p882_p7, %p881_p6 }
  0x30   :  { %p884_p9 = pnand %p883_p8, %p877_p5 }
  0x32   :  { %887 = shalt.err (!%p884_p9)
}
  0x33   :  { %44 = dma.hbm_to_vmem [thread:$0]  %s1085_s2, 32, %s42_s13, [#allocation6]  }
  0x34   :  { %910 = dma.done.wait [#allocation3], 2048  }
  0x35   :  { %911 = vsyncadd [#allocation3], 4294965248 }
  0x36   :  { %912 = dma.done.wait [#allocation6], 544  }
  0x37   :  { %913 = vsyncadd [#allocation6], 4294966752  ;;  %v923_v0 = vmov 0   ;;  %v800_v1 = vld [vmem:[#allocation5 + $0x4] ss:$8 sps:$4 sm:$0xff]   ;;  %vm203_vm0 = vcmask 261120   ;;  %v93_v21 = vlaneseq }
  0x38   :  { %284 = vmatprep.mubr.bf16.mxu0 %v923_v0  ;;  %364 = vmatprep.mubr.bf16.mxu1 %v923_v0  ;;  %v802_v2 = vld [vmem:[#allocation5] ss:$8 sps:$4 sm:$0xff]   ;;  %v803_v3 = vld [vmem:[#allocation5 + $0x14] ss:$8 sps:$4 sm:$0xff]   ;;  %v805_v4 = vld [vmem:[#allocation5 + $0x10] ss:$8 sps:$4 sm:$0xff]  }
  0x39   :  { %252 = vmatprep.subr.bf16.mxu0 %v800_v1  ;;  %787 = vmatprep.subr.bf16.mxu1 %v800_v1  ;;  %v806_v5 = vld [vmem:[#allocation2] sm:$0xff]   ;;  %v808_v7 = vld [vmem:[#allocation2 + $0x8] sm:$0xff]   ;;  %v810_v9 = vld [vmem:[#allocation2 + $0x10] sm:$0xff]   ;;  %v94_v22 = vshrl.u32 %v93_v21, 7  ;;  %s924_s2 = smov [#allocation8]  }
  0x3a   :  { %253 = vmatpush1.bf16.msra.mxu0 %v802_v2  ;;  %789 = vmatpush1.bf16.msra.mxu1 %v802_v2  ;;  %v807_v6 = vld [vmem:[#allocation2 + $0x40] sm:$0xff]   ;;  %v809_v8 = vld [vmem:[#allocation2 + $0x48] sm:$0xff]   ;;  %v811_v10 = vld [vmem:[#allocation2 + $0x50] sm:$0xff]   ;;  %s674_s25 = sshll.u32 %s924_s2, 4  ;;  %s675_s25 = int_to_ptr.vmem [resolvable:$true] %s674_s25 }
  0x3b   :  { %254 = vmatprep.subr.bf16.mxu0 %v803_v3  ;;  %788 = vmatprep.subr.bf16.mxu1 %v803_v3  ;;  %v812_v11 = vld [vmem:[#allocation2 + $0x18] sm:$0xff]   ;;  %v814_v13 = vld [vmem:[#allocation2 + $0x20] sm:$0xff]   ;;  %v816_v15 = vld [vmem:[#allocation2 + $0x28] sm:$0xff]   ;;  %v95_v23 = vsub.s32 0, %v94_v22  ;;  %v99_v25 = vsub.s32 1, %v94_v22  ;;  %s888_s26 = scalar_lea.vmem %s675_s25, 4096  ;;  %p893_p11 = scmp.lt.s32.totalorder %s675_s25, %s675_s25 }
  0x3c   :  { %v813_v12 = vld [vmem:[#allocation2 + $0x58] sm:$0xff]   ;;  %v815_v14 = vld [vmem:[#allocation2 + $0x60] sm:$0xff]   ;;  %v817_v16 = vld [vmem:[#allocation2 + $0x68] sm:$0xff]   ;;  %p889_p10 = scmp.ne.s32.totalorder %s675_s25, %s888_s26  ;;  %p894_p12 = scmp.lt.s32.totalorder %s888_s26, %s888_s26 }
  0x3d   :  { %v818_v17 = vld [vmem:[#allocation2 + $0x30] sm:$0xff]   ;;  %v820_v19 = vld [vmem:[#allocation2 + $0x38] sm:$0xff]   ;;  %v91_v24 = vld [vmem:[#allocation7] sm:$0x3] }
  0x3e   :  { %255 = vmatpush1.bf16.msra.mxu0 %v805_v4  ;;  %790 = vmatpush1.bf16.msra.mxu1 %v805_v4  ;;  %v819_v18 = vld [vmem:[#allocation2 + $0x70] sm:$0xff]   ;;  %v821_v20 = vld [vmem:[#allocation2 + $0x78] sm:$0xff]   ;;  %v1000_v26 = vrot.slane %v91_v24, %v95_v23  ;;  %v1002_v27 = vrot.slane %v91_v24, %v99_v25  ;;  %p895_p13 = por %p894_p12, %p893_p11 }
  0x40   :  { %p896_p0 = pnand %p895_p13, %p889_p10 }
  0x41   :  { %707 = vmatmul.mubr.msk.bf16.vlgmr.msra.gmra.mrb[0].mxu0 %vm203_vm0, %v806_v5  ;;  %715 = vmatmul.mubr.msk.bf16.vlgmr.msra.gmra.mrb[0].mxu1 %vm203_vm0, %v807_v6 }
  0x42   :  { %294 = vmatprep.mubr.bf16.mxu0 %v923_v0  ;;  %374 = vmatprep.mubr.bf16.mxu1 %v923_v0 }
  0x49   :  { %708 = vmatmul.mubr.msk.bf16.gmra.mrb[4].mxu0 %vm203_vm0, %v808_v7  ;;  %716 = vmatmul.mubr.msk.bf16.gmra.mrb[4].mxu1 %vm203_vm0, %v809_v8 }
  0x4a   :  { %304 = vmatprep.mubr.bf16.mxu0 %v923_v0  ;;  %384 = vmatprep.mubr.bf16.mxu1 %v923_v0 }
  0x51   :  { %709 = vmatmul.mubr.msk.bf16.gmra.mrb[8].mxu0 %vm203_vm0, %v810_v9  ;;  %717 = vmatmul.mubr.msk.bf16.gmra.mrb[8].mxu1 %vm203_vm0, %v811_v10 }
  0x52   :  { %314 = vmatprep.mubr.bf16.mxu0 %v923_v0  ;;  %394 = vmatprep.mubr.bf16.mxu1 %v923_v0 }
  0x59   :  { %710 = vmatmul.mubr.msk.bf16.gmra.mrb[12].mxu0 %vm203_vm0, %v812_v11  ;;  %718 = vmatmul.mubr.msk.bf16.gmra.mrb[12].mxu1 %vm203_vm0, %v813_v12 }
  0x5a   :  { %324 = vmatprep.mubr.bf16.mxu0 %v923_v0  ;;  %404 = vmatprep.mubr.bf16.mxu1 %v923_v0 }
  0x61   :  { %711 = vmatmul.mubr.msk.bf16.gmra.mrb[16].mxu0 %vm203_vm0, %v814_v13  ;;  %719 = vmatmul.mubr.msk.bf16.gmra.mrb[16].mxu1 %vm203_vm0, %v815_v14 }
  0x62   :  { %334 = vmatprep.mubr.bf16.mxu0 %v923_v0  ;;  %414 = vmatprep.mubr.bf16.mxu1 %v923_v0 }
  0x69   :  { %712 = vmatmul.mubr.msk.bf16.gmra.mrb[20].mxu0 %vm203_vm0, %v816_v15  ;;  %720 = vmatmul.mubr.msk.bf16.gmra.mrb[20].mxu1 %vm203_vm0, %v817_v16 }
  0x6a   :  { %344 = vmatprep.mubr.bf16.mxu0 %v923_v0  ;;  %424 = vmatprep.mubr.bf16.mxu1 %v923_v0 }
  0x71   :  { %713 = vmatmul.mubr.msk.bf16.gmra.mrb[24].mxu0 %vm203_vm0, %v818_v17  ;;  %721 = vmatmul.mubr.msk.bf16.gmra.mrb[24].mxu1 %vm203_vm0, %v819_v18 }
  0x72   :  { %354 = vmatprep.mubr.bf16.mxu0 %v923_v0  ;;  %434 = vmatprep.mubr.bf16.mxu1 %v923_v0 }
  0x79   :  { %714 = vmatmul.mubr.msk.bf16.gmra.mrb[28].mxu0 %vm203_vm0, %v820_v19  ;;  %722 = vmatmul.mubr.msk.bf16.gmra.mrb[28].mxu1 %vm203_vm0, %v821_v20 }
 0x114   :  { %v286_v28 = vpop.f32.mrb[0].mxu0  ;;  %v366_v29 = vpop.f32.mrb[0].mxu1 }
 0x115   :  { %v287_v30 = vadd.f32 %v286_v28, %v1000_v26  ;;  %v367_v31 = vadd.f32 %v366_v29, %v1000_v26  ;;  %v288_v32 = vpop.f32.mrb[1].mxu0  ;;  %v368_v33 = vpop.f32.mrb[1].mxu1 }
 0x116   :  { %v289_v34 = vadd.f32 %v288_v32, %v1002_v27  ;;  %v369_v35 = vadd.f32 %v368_v33, %v1002_v27  ;;  %v290_v36 = vpop.f32.mrb[2].mxu0  ;;  %v370_v37 = vpop.f32.mrb[2].mxu1 }
 0x117   :  { %v291_v38 = vadd.f32 %v290_v36, %v1000_v26  ;;  %v371_v39 = vadd.f32 %v370_v37, %v1000_v26  ;;  %v292_v40 = vpop.f32.mrb[3].mxu0  ;;  %v372_v41 = vpop.f32.mrb[3].mxu1 }
 0x118   :  { %v755_v42 = vpack.c.bf16 %v289_v34, %v287_v30  ;;  %v771_v43 = vpack.c.bf16 %v369_v35, %v367_v31  ;;  %v293_v44 = vadd.f32 %v292_v40, %v1002_v27  ;;  %v373_v45 = vadd.f32 %v372_v41, %v1002_v27 }
 0x11a   :  { %637 = vst [vmem:[#allocation8] sm:$0xff] %v755_v42  ;;  %653 = vst [vmem:[#allocation8 + $0x80] sm:$0xff] %v771_v43  ;;  %v756_v46 = vpack.c.bf16 %v293_v44, %v291_v38  ;;  %v772_v47 = vpack.c.bf16 %v373_v45, %v371_v39 }
 0x11c   :  { %638 = vst [vmem:[#allocation8 + $0x8] sm:$0xff] %v756_v46  ;;  %654 = vst [vmem:[#allocation8 + $0x88] sm:$0xff] %v772_v47  ;;  %v296_v48 = vpop.f32.mrb[4].mxu0  ;;  %v376_v49 = vpop.f32.mrb[4].mxu1 }
 0x11d   :  { %v297_v50 = vadd.f32 %v296_v48, %v1000_v26  ;;  %v377_v51 = vadd.f32 %v376_v49, %v1000_v26  ;;  %v298_v52 = vpop.f32.mrb[5].mxu0  ;;  %v378_v53 = vpop.f32.mrb[5].mxu1 }
 0x11e   :  { %v299_v54 = vadd.f32 %v298_v52, %v1002_v27  ;;  %v379_v55 = vadd.f32 %v378_v53, %v1002_v27  ;;  %v300_v56 = vpop.f32.mrb[6].mxu0  ;;  %v380_v57 = vpop.f32.mrb[6].mxu1 }
 0x11f   :  { %v301_v58 = vadd.f32 %v300_v56, %v1000_v26  ;;  %v381_v59 = vadd.f32 %v380_v57, %v1000_v26  ;;  %v302_v60 = vpop.f32.mrb[7].mxu0  ;;  %v382_v61 = vpop.f32.mrb[7].mxu1 }
 0x120   :  { %v757_v62 = vpack.c.bf16 %v299_v54, %v297_v50  ;;  %v773_v63 = vpack.c.bf16 %v379_v55, %v377_v51  ;;  %v303_v0 = vadd.f32 %v302_v60, %v1002_v27  ;;  %v383_v1 = vadd.f32 %v382_v61, %v1002_v27 }
 0x122   :  { %639 = vst [vmem:[#allocation8 + $0x10] sm:$0xff] %v757_v62  ;;  %655 = vst [vmem:[#allocation8 + $0x90] sm:$0xff] %v773_v63  ;;  %v758_v2 = vpack.c.bf16 %v303_v0, %v301_v58  ;;  %v774_v3 = vpack.c.bf16 %v383_v1, %v381_v59 }
 0x124   :  { %640 = vst [vmem:[#allocation8 + $0x18] sm:$0xff] %v758_v2  ;;  %656 = vst [vmem:[#allocation8 + $0x98] sm:$0xff] %v774_v3  ;;  %v306_v4 = vpop.f32.mrb[8].mxu0  ;;  %v386_v5 = vpop.f32.mrb[8].mxu1 }
 0x125   :  { %v307_v6 = vadd.f32 %v306_v4, %v1000_v26  ;;  %v387_v7 = vadd.f32 %v386_v5, %v1000_v26  ;;  %v308_v8 = vpop.f32.mrb[9].mxu0  ;;  %v388_v9 = vpop.f32.mrb[9].mxu1 }
 0x126   :  { %v309_v10 = vadd.f32 %v308_v8, %v1002_v27  ;;  %v389_v11 = vadd.f32 %v388_v9, %v1002_v27  ;;  %v310_v12 = vpop.f32.mrb[10].mxu0  ;;  %v390_v13 = vpop.f32.mrb[10].mxu1 }
 0x127   :  { %v311_v14 = vadd.f32 %v310_v12, %v1000_v26  ;;  %v391_v15 = vadd.f32 %v390_v13, %v1000_v26  ;;  %v312_v16 = vpop.f32.mrb[11].mxu0  ;;  %v392_v17 = vpop.f32.mrb[11].mxu1 }
 0x128   :  { %v759_v18 = vpack.c.bf16 %v309_v10, %v307_v6  ;;  %v775_v19 = vpack.c.bf16 %v389_v11, %v387_v7  ;;  %v313_v20 = vadd.f32 %v312_v16, %v1002_v27  ;;  %v393_v21 = vadd.f32 %v392_v17, %v1002_v27 }
 0x12a   :  { %641 = vst [vmem:[#allocation8 + $0x20] sm:$0xff] %v759_v18  ;;  %657 = vst [vmem:[#allocation8 + $0xa0] sm:$0xff] %v775_v19  ;;  %v760_v22 = vpack.c.bf16 %v313_v20, %v311_v14  ;;  %v776_v23 = vpack.c.bf16 %v393_v21, %v391_v15 }
 0x12c   :  { %642 = vst [vmem:[#allocation8 + $0x28] sm:$0xff] %v760_v22  ;;  %658 = vst [vmem:[#allocation8 + $0xa8] sm:$0xff] %v776_v23  ;;  %v316_v24 = vpop.f32.mrb[12].mxu0  ;;  %v396_v25 = vpop.f32.mrb[12].mxu1 }
 0x12d   :  { %v317_v28 = vadd.f32 %v316_v24, %v1000_v26  ;;  %v397_v29 = vadd.f32 %v396_v25, %v1000_v26  ;;  %v318_v30 = vpop.f32.mrb[13].mxu0  ;;  %v398_v31 = vpop.f32.mrb[13].mxu1 }
 0x12e   :  { %v319_v32 = vadd.f32 %v318_v30, %v1002_v27  ;;  %v399_v33 = vadd.f32 %v398_v31, %v1002_v27  ;;  %v320_v34 = vpop.f32.mrb[14].mxu0  ;;  %v400_v35 = vpop.f32.mrb[14].mxu1 }
 0x12f   :  { %v321_v36 = vadd.f32 %v320_v34, %v1000_v26  ;;  %v401_v37 = vadd.f32 %v400_v35, %v1000_v26  ;;  %v322_v38 = vpop.f32.mrb[15].mxu0  ;;  %v402_v39 = vpop.f32.mrb[15].mxu1 }
 0x130   :  { %v761_v40 = vpack.c.bf16 %v319_v32, %v317_v28  ;;  %v777_v41 = vpack.c.bf16 %v399_v33, %v397_v29  ;;  %v323_v42 = vadd.f32 %v322_v38, %v1002_v27  ;;  %v403_v43 = vadd.f32 %v402_v39, %v1002_v27 }
 0x132   :  { %643 = vst [vmem:[#allocation8 + $0x30] sm:$0xff] %v761_v40  ;;  %659 = vst [vmem:[#allocation8 + $0xb0] sm:$0xff] %v777_v41  ;;  %v762_v44 = vpack.c.bf16 %v323_v42, %v321_v36  ;;  %v778_v45 = vpack.c.bf16 %v403_v43, %v401_v37 }
 0x134   :  { %644 = vst [vmem:[#allocation8 + $0x38] sm:$0xff] %v762_v44  ;;  %660 = vst [vmem:[#allocation8 + $0xb8] sm:$0xff] %v778_v45  ;;  %v326_v46 = vpop.f32.mrb[16].mxu0  ;;  %v406_v47 = vpop.f32.mrb[16].mxu1 }
 0x135   :  { %v327_v48 = vadd.f32 %v326_v46, %v1000_v26  ;;  %v407_v49 = vadd.f32 %v406_v47, %v1000_v26  ;;  %v328_v50 = vpop.f32.mrb[17].mxu0  ;;  %v408_v51 = vpop.f32.mrb[17].mxu1 }
 0x136   :  { %v329_v52 = vadd.f32 %v328_v50, %v1002_v27  ;;  %v409_v53 = vadd.f32 %v408_v51, %v1002_v27  ;;  %v330_v54 = vpop.f32.mrb[18].mxu0  ;;  %v410_v55 = vpop.f32.mrb[18].mxu1 }
 0x137   :  { %v331_v56 = vadd.f32 %v330_v54, %v1000_v26  ;;  %v411_v57 = vadd.f32 %v410_v55, %v1000_v26  ;;  %v332_v58 = vpop.f32.mrb[19].mxu0  ;;  %v412_v59 = vpop.f32.mrb[19].mxu1 }
 0x138   :  { %v763_v60 = vpack.c.bf16 %v329_v52, %v327_v48  ;;  %v779_v61 = vpack.c.bf16 %v409_v53, %v407_v49  ;;  %v333_v62 = vadd.f32 %v332_v58, %v1002_v27  ;;  %v413_v63 = vadd.f32 %v412_v59, %v1002_v27 }
 0x13a   :  { %645 = vst [vmem:[#allocation8 + $0x40] sm:$0xff] %v763_v60  ;;  %661 = vst [vmem:[#allocation8 + $0xc0] sm:$0xff] %v779_v61  ;;  %v764_v0 = vpack.c.bf16 %v333_v62, %v331_v56  ;;  %v780_v1 = vpack.c.bf16 %v413_v63, %v411_v57 }
 0x13c   :  { %646 = vst [vmem:[#allocation8 + $0x48] sm:$0xff] %v764_v0  ;;  %662 = vst [vmem:[#allocation8 + $0xc8] sm:$0xff] %v780_v1  ;;  %v336_v2 = vpop.f32.mrb[20].mxu0  ;;  %v416_v3 = vpop.f32.mrb[20].mxu1 }
 0x13d   :  { %v337_v4 = vadd.f32 %v336_v2, %v1000_v26  ;;  %v417_v5 = vadd.f32 %v416_v3, %v1000_v26  ;;  %v338_v6 = vpop.f32.mrb[21].mxu0  ;;  %v418_v7 = vpop.f32.mrb[21].mxu1 }
 0x13e   :  { %v339_v8 = vadd.f32 %v338_v6, %v1002_v27  ;;  %v419_v9 = vadd.f32 %v418_v7, %v1002_v27  ;;  %v340_v10 = vpop.f32.mrb[22].mxu0  ;;  %v420_v11 = vpop.f32.mrb[22].mxu1 }
 0x13f   :  { %v341_v12 = vadd.f32 %v340_v10, %v1000_v26  ;;  %v421_v13 = vadd.f32 %v420_v11, %v1000_v26  ;;  %v342_v14 = vpop.f32.mrb[23].mxu0  ;;  %v422_v15 = vpop.f32.mrb[23].mxu1 }
 0x140   :  { %v765_v16 = vpack.c.bf16 %v339_v8, %v337_v4  ;;  %v781_v17 = vpack.c.bf16 %v419_v9, %v417_v5  ;;  %v343_v18 = vadd.f32 %v342_v14, %v1002_v27  ;;  %v423_v19 = vadd.f32 %v422_v15, %v1002_v27 }
 0x142   :  { %647 = vst [vmem:[#allocation8 + $0x50] sm:$0xff] %v765_v16  ;;  %663 = vst [vmem:[#allocation8 + $0xd0] sm:$0xff] %v781_v17  ;;  %v766_v20 = vpack.c.bf16 %v343_v18, %v341_v12  ;;  %v782_v21 = vpack.c.bf16 %v423_v19, %v421_v13 }
 0x144   :  { %648 = vst [vmem:[#allocation8 + $0x58] sm:$0xff] %v766_v20  ;;  %664 = vst [vmem:[#allocation8 + $0xd8] sm:$0xff] %v782_v21  ;;  %v346_v22 = vpop.f32.mrb[24].mxu0  ;;  %v426_v23 = vpop.f32.mrb[24].mxu1 }
 0x145   :  { %v347_v24 = vadd.f32 %v346_v22, %v1000_v26  ;;  %v427_v25 = vadd.f32 %v426_v23, %v1000_v26  ;;  %v348_v28 = vpop.f32.mrb[25].mxu0  ;;  %v428_v29 = vpop.f32.mrb[25].mxu1 }
 0x146   :  { %v349_v30 = vadd.f32 %v348_v28, %v1002_v27  ;;  %v429_v31 = vadd.f32 %v428_v29, %v1002_v27  ;;  %v350_v32 = vpop.f32.mrb[26].mxu0  ;;  %v430_v33 = vpop.f32.mrb[26].mxu1 }
 0x147   :  { %v351_v34 = vadd.f32 %v350_v32, %v1000_v26  ;;  %v431_v35 = vadd.f32 %v430_v33, %v1000_v26  ;;  %v352_v36 = vpop.f32.mrb[27].mxu0  ;;  %v432_v37 = vpop.f32.mrb[27].mxu1 }
 0x148   :  { %v767_v38 = vpack.c.bf16 %v349_v30, %v347_v24  ;;  %v783_v39 = vpack.c.bf16 %v429_v31, %v427_v25  ;;  %v353_v40 = vadd.f32 %v352_v36, %v1002_v27  ;;  %v433_v41 = vadd.f32 %v432_v37, %v1002_v27 }
 0x14a   :  { %649 = vst [vmem:[#allocation8 + $0x60] sm:$0xff] %v767_v38  ;;  %665 = vst [vmem:[#allocation8 + $0xe0] sm:$0xff] %v783_v39  ;;  %v768_v42 = vpack.c.bf16 %v353_v40, %v351_v34  ;;  %v784_v43 = vpack.c.bf16 %v433_v41, %v431_v35 }
 0x14c   :  { %650 = vst [vmem:[#allocation8 + $0x68] sm:$0xff] %v768_v42  ;;  %666 = vst [vmem:[#allocation8 + $0xe8] sm:$0xff] %v784_v43  ;;  %v356_v44 = vpop.f32.mrb[28].mxu0  ;;  %v436_v45 = vpop.f32.mrb[28].mxu1 }
 0x14d   :  { %v357_v46 = vadd.f32 %v356_v44, %v1000_v26  ;;  %v437_v47 = vadd.f32 %v436_v45, %v1000_v26  ;;  %v358_v48 = vpop.f32.mrb[29].mxu0  ;;  %v438_v49 = vpop.f32.mrb[29].mxu1 }
 0x14e   :  { %v359_v50 = vadd.f32 %v358_v48, %v1002_v27  ;;  %v439_v51 = vadd.f32 %v438_v49, %v1002_v27  ;;  %v360_v52 = vpop.f32.mrb[30].mxu0  ;;  %v440_v53 = vpop.f32.mrb[30].mxu1 }
 0x14f   :  { %v361_v54 = vadd.f32 %v360_v52, %v1000_v26  ;;  %v441_v55 = vadd.f32 %v440_v53, %v1000_v26  ;;  %v362_v56 = vpop.f32.mrb[31].mxu0  ;;  %v442_v57 = vpop.f32.mrb[31].mxu1 }
 0x150   :  { %v769_v58 = vpack.c.bf16 %v359_v50, %v357_v46  ;;  %v785_v59 = vpack.c.bf16 %v439_v51, %v437_v47  ;;  %v363_v60 = vadd.f32 %v362_v56, %v1002_v27  ;;  %v443_v61 = vadd.f32 %v442_v57, %v1002_v27 }
 0x152   :  { %651 = vst [vmem:[#allocation8 + $0x70] sm:$0xff] %v769_v58  ;;  %667 = vst [vmem:[#allocation8 + $0xf0] sm:$0xff] %v785_v59  ;;  %v770_v62 = vpack.c.bf16 %v363_v60, %v361_v54  ;;  %v786_v63 = vpack.c.bf16 %v443_v61, %v441_v55 }
 0x154   :  { %652 = vst [vmem:[#allocation8 + $0x78] sm:$0xff] %v770_v62  ;;  %668 = vst [vmem:[#allocation8 + $0xf8] sm:$0xff] %v786_v63 }
 0x155   :  { %899 = shalt.err (!%p896_p0)
}
 0x156   :  { %s900_s29 = scalar_lea.hbm %s1086_s3, 4096 }
 0x157   :  { %p901_p1 = scmp.ne.s32.totalorder %s1086_s3, %s900_s29  ;;  %p904_p2 = scmp.lt.u32.totalorder %s900_s29, %s1086_s3 }
 0x159   :  { %p906_p3 = pnand %p904_p2, %p901_p1 }
 0x15b   :  { %909 = shalt.err (!%p906_p3)
}
 0x15c   :  { %680 = dma.vmem_to_hbm [thread:$0]  %s675_s25, 4096, %s1086_s3, [#allocation4], %s917_s22, %s917_s22, %s918_s23  }
 0x15d   :  { %914 = dma.done.wait [#allocation4], 4096  }
 0x15e   :  { %915 = vsyncadd [#allocation4], 4294963200 }
 0x15f   :  { %684 = vsyncpa [#allocation3], 1 }
 0x160   :  { %685 = vsyncpa [#allocation6], 1 }
 0x161   :  { %686 = vsyncpa [#allocation4], 1 }

</bundles_post_ra>
